<compile_context>
chip_gen: v5e
topology: v5e:2x2
jax: 0.10.0
libtpu: 0.0.40
codegen_flags: <defaults>
</compile_context>

<pallas_src>
import functools

import jax
import jax.numpy as jnp
from jax.experimental import pallas as pl
from jax.experimental.pallas import tpu as pltpu


def _rmsnorm_kernel(x_ref, w1_ref, o_ref, *, eps):
    # Upcast to f32 (matches x.float() in the torch module).
    x = x_ref[...].astype(jnp.float32)              # (tm, D)
    ms = jnp.mean(x * x, axis=-1, keepdims=True)    # (tm, 1)  -> XLU reduce
    inv = jax.lax.rsqrt(ms + eps)                   # (tm, 1)  -> EUP
    # w1_ref holds (1 + weight) in f32, precomputed in the wrapper.
    y = x * inv * w1_ref[...]                       # VPU, broadcast (1, D)
    o_ref[...] = y.astype(o_ref.dtype)              # type_as(x)


def _vmem_capacity_bytes():
    """Per-TensorCore VMEM capacity; conservative fallback if query fails."""
    try:
        info = pltpu.get_tpu_info()
        cap = getattr(info, "vmem_capacity_bytes", None)
        if cap:
            return int(cap)
    except Exception:
        pass
    return 64 * 1024 * 1024  # conservative (v7x per-TC VMEM)


def _round_up(n, m):
    return ((n + m - 1) // m) * m


def gemma2_rmsnorm(x, weight, eps=1e-6, *, tile_rows=None, vmem_limit_bytes=None):
    """x: (..., dim) float array; weight: (dim,) parameter (zeros-initialized)."""
    orig_shape = x.shape
    dim = orig_shape[-1]
    rows = 1
    for s in orig_shape[:-1]:
        rows *= s

    x2 = x.reshape(rows, dim)
    # Hoist the (1 + weight) computation out of the per-tile body.
    w1 = (1.0 + weight.astype(jnp.float32)).reshape(1, dim)

    itemsize = jnp.dtype(x.dtype).itemsize
    # Dtype-aware sublane packing: 8 rows (f32), 16 (bf16), 32 (int8/fp8).
    sublane = max(8, 32 // itemsize)

    cap = _vmem_capacity_bytes()

    # Per-row VMEM footprint: double-buffered in tile + double-buffered out tile
    # (4 * itemsize) plus f32 temporaries inside the kernel (upcast x, pre-cast y).
    # TODO(synk): verify via pl.lower_as_mlir whether both f32 temps materialize;
    # if only one does, "+ 8" can shrink to "+ 4" for ~25% bigger bf16 tiles.
    bytes_per_row = dim * (4 * itemsize + 8)

    if tile_rows is None:
        # Bytes-based cap (no arbitrary row ceiling): use a generation-aware
        # fraction of VMEM (~72 MiB on 128 MiB parts, ~36 MiB on v7x's 64 MiB).
        budget = (cap * 9) // 16
        tile_rows = budget // max(bytes_per_row, 1)

    tile_rows = max(sublane, (int(tile_rows) // sublane) * sublane)
    # Don't exceed the problem size (keeps at most one partial last block).
    tile_rows = min(tile_rows, max(sublane, (rows // sublane) * sublane))
    # Guarantee >= 2 grid steps when possible so "parallel" shards row tiles
    # across both v7x TensorCores (both stream HBM); negligible cost elsewhere.
    if rows >= 2 * sublane:
        half = _round_up((rows + 1) // 2, sublane)
        tile_rows = min(tile_rows, half)

    grid = pl.cdiv(rows, tile_rows)

    if vmem_limit_bytes is None:
        usage = (
            tile_rows * dim * (2 * itemsize)      # double-buffered input tile
            + tile_rows * dim * (2 * itemsize)    # double-buffered output tile
            + tile_rows * dim * 8                 # f32 temporaries in the body
            + dim * 8                             # resident (1 + weight), buffered
            + (4 << 20)                           # compiler scratch / semaphores
        )
        # Never request more than ~85% of physical VMEM (headroom on v7x's 64 MiB),
        # and keep at least 16 MiB so small problems are not artificially squeezed.
        vmem_limit_bytes = int(min(cap * 85 // 100, max(usage, 16 << 20)))

    out = pl.pallas_call(
        functools.partial(_rmsnorm_kernel, eps=eps),
        out_shape=jax.ShapeDtypeStruct((rows, dim), x.dtype),
        grid_spec=pltpu.PrefetchScalarGridSpec(
            num_scalar_prefetch=0,
            grid=(grid,),
            in_specs=[
                pl.BlockSpec((tile_rows, dim), lambda i: (i, 0)),
                # Constant index_map keeps (1 + weight) resident in VMEM
                # across the whole grid with a single DMA.
                pl.BlockSpec((1, dim), lambda i: (0, 0)),
            ],
            out_specs=pl.BlockSpec((tile_rows, dim), lambda i: (i, 0)),
        ),
        compiler_params=pltpu.CompilerParams(
            dimension_semantics=("parallel",),
            vmem_limit_bytes=vmem_limit_bytes,
        ),
    )(x2, w1)

    return out.reshape(orig_shape)


def gemma2_rmsnorm_ref(x, weight, eps=1e-6):
    xf = x.astype(jnp.float32)
    ms = jnp.mean(xf * xf, axis=-1, keepdims=True)
    y = xf * jax.lax.rsqrt(ms + eps)
    y = y * (1.0 + weight.astype(jnp.float32))
    return y.astype(x.dtype)


def _run_case(shape, dtype, key):
    kx, kw = jax.random.split(key)
    dim = shape[-1]
    # bf16/f32 input exercises the .float() / type_as(x) round-trip.
    x = jax.random.normal(kx, shape, dtype=jnp.float32).astype(dtype)
    # Module initializes weight as zeros(dim); perturb slightly (deterministic)
    # so the (1 + weight) scaling path is exercised.
    weight = 0.01 * jax.random.normal(kw, (dim,), dtype=jnp.float32)

    out = jax.block_until_ready(gemma2_rmsnorm(x, weight, eps=1e-6))
    ref = gemma2_rmsnorm_ref(x, weight, eps=1e-6)

    assert out.shape == x.shape and out.dtype == x.dtype
    err = float(jnp.max(jnp.abs(out.astype(jnp.float32) - ref.astype(jnp.float32))))
    tol = 1e-2 if dtype == jnp.bfloat16 else 1e-4
    assert err < tol, f"{shape} {dtype}: max abs err {err}"


if __name__ == "__main__":
    keys = jax.random.split(jax.random.PRNGKey(0), 3)
    # Exact tiling, bf16 (rows = 16, single tile).
    _run_case((2, 8, 128), jnp.bfloat16, keys[0])
    # Partial last block: rows = 24, tile_rows = 16 -> rows % tile_rows != 0.
    _run_case((3, 8, 32), jnp.bfloat16, keys[1])
    # f32 path (sublane rounding of 8; grid forced to 2 steps).
    _run_case((2, 8, 64), jnp.float32, keys[2])
    print("KERNEL_OK")
</pallas_src>

<mosaic_0001>
module attributes {stable_mosaic.version = 11 : i64} {
  func.func @_rmsnorm_kernel(%arg0: i32, %arg1: memref<16x128xbf16, #tpu.memory_space<vmem>>, %arg2: memref<1x128xf32, #tpu.memory_space<vmem>>, %arg3: memref<16x128xbf16, #tpu.memory_space<vmem>>) attributes {dimension_semantics = [#tpu.dimension_semantics<parallel>], iteration_bounds = array<i64: 1>, scalar_prefetch = 0 : i64, scratch_operands = 0 : i64, tpu.core_type = #tpu.core_type<tc>, window_params = [{transform_indices = @transform_0, window_bounds = array<i64: 16, 128>}, {pipeline_mode = #tpu.pipeline_mode<synchronous>, transform_indices = @transform_1, window_bounds = array<i64: 1, 128>}, {transform_indices = @transform_2, window_bounds = array<i64: 16, 128>}]} {
    %c0 = arith.constant 0 : index
    %c0_0 = arith.constant 0 : index
    %0 = vector.load %arg1[%c0, %c0_0] : memref<16x128xbf16, #tpu.memory_space<vmem>>, vector<16x128xbf16>
    %1 = arith.extf %0 : vector<16x128xbf16> to vector<16x128xf32>
    %2 = arith.mulf %1, %1 : vector<16x128xf32>
    %cst = arith.constant dense<0.000000e+00> : vector<16xf32>
    %3 = vector.multi_reduction <add>, %2, %cst [1] : vector<16x128xf32> to vector<16xf32>
    %4 = vector.shape_cast %3 : vector<16xf32> to vector<16x1xf32>
    %cst_1 = arith.constant 1.280000e+02 : f32
    %5 = vector.broadcast %cst_1 : f32 to vector<16x1xf32>
    %6 = arith.divf %4, %5 : vector<16x1xf32>
    %cst_2 = arith.constant 9.99999997E-7 : f32
    %7 = vector.broadcast %cst_2 : f32 to vector<16x1xf32>
    %8 = arith.addf %6, %7 : vector<16x1xf32>
    %9 = math.rsqrt %8 : vector<16x1xf32>
    %10 = vector.broadcast %9 : vector<16x1xf32> to vector<16x128xf32>
    %11 = arith.mulf %1, %10 : vector<16x128xf32>
    %c0_3 = arith.constant 0 : index
    %c0_4 = arith.constant 0 : index
    %12 = vector.load %arg2[%c0_3, %c0_4] : memref<1x128xf32, #tpu.memory_space<vmem>>, vector<1x128xf32>
    %13 = vector.broadcast %12 : vector<1x128xf32> to vector<16x128xf32>
    %14 = arith.mulf %11, %13 : vector<16x128xf32>
    %15 = arith.truncf %14 : vector<16x128xf32> to vector<16x128xbf16>
    %c0_5 = arith.constant 0 : index
    %c0_6 = arith.constant 0 : index
    %16 = vector.load %arg3[%c0_5, %c0_6] : memref<16x128xbf16, #tpu.memory_space<vmem>>, vector<16x128xbf16>
    tpu.vector_store %arg3[%c0_5, %c0_6], %15 {strides = array<i32>} : memref<16x128xbf16, #tpu.memory_space<vmem>>, vector<16x128xbf16>,
    return
  }
  func.func @transform_0(%arg0: i32) -> (i32, i32) {
    %c0_i32 = arith.constant 0 : i32
    %c0_i32_0 = arith.constant 0 : i32
    return %arg0, %c0_i32 : i32, i32
  }
  func.func @transform_1(%arg0: i32) -> (i32, i32) {
    %c0_i32 = arith.constant 0 : i32
    %c0_i32_0 = arith.constant 0 : i32
    %c0_i32_1 = arith.constant 0 : i32
    return %c0_i32, %c0_i32_0 : i32, i32
  }
  func.func @transform_2(%arg0: i32) -> (i32, i32) {
    %c0_i32 = arith.constant 0 : i32
    %c0_i32_0 = arith.constant 0 : i32
    return %arg0, %c0_i32 : i32, i32
  }
}

</mosaic_0001>

<bundles_post_ra>
// kernel: tpu_custom_call.1
= control target key start
LH: loop header
LB: loop body
LE: loop exit
PB: predicated region body
PF: predicated region fallthrough
CT: control target
= control target key end

     0   :  { %7 = vsyncpa [#allocation3], 0  ;;  %s251_s0 = inlined_call_operand.hbm [shape: bf16[16,128], index: 0, kind: input, shape index: {}]   ;;  %s252_s1 = inlined_call_operand.hbm [shape: f32[1,128], index: 1, kind: input, shape index: {}]   ;;  %s253_s2 = inlined_call_operand.hbm [shape: bf16[16,128], index: 2, kind: output, shape index: {}]  }
   0x1   :  { %8 = vsyncpa [#allocation6], 0 }
   0x2   :  { %9 = vsyncpa [#allocation4], 0  ;;  %s14_s11 = sshll.u32 %s251_s0, 4  ;;  %s215_s12 = smov [#allocation2]   ;;  %s15_s11 = int_to_ptr.hbm [resolvable:$true] %s14_s11 }
   0x3   :  { %s16_s13 = sshll.u32 %s215_s12, 4  ;;  %s28_s16 = sshll.u32 %s252_s1, 4  ;;  %s17_s13 = int_to_ptr.vmem [resolvable:$true] %s16_s13  ;;  %s29_s16 = int_to_ptr.hbm [resolvable:$true] %s28_s16 }
   0x4   :  { %s216_s17 = smov 64   ;;  %s217_s18 = smov 4  }
   0x5   :  { %22 = dma.hbm_to_vmem [thread:$0]  %s15_s11, 128, %s17_s13, [#allocation3], %s216_s17, %s216_s17, %s217_s18  }
   0x6   :  { %s218_s19 = smov [#allocation5]  }
   0x7   :  { %s30_s20 = sshll.u32 %s218_s19, 4  ;;  %s31_s20 = int_to_ptr.vmem [resolvable:$true] %s30_s20 }
   0x8   :  { %33 = dma.hbm_to_vmem [thread:$0]  %s29_s16, 16, %s31_s20, [#allocation6]  }
   0x9   :  { %209 = dma.done.wait [#allocation3], 128  }
   0xa   :  { %210 = vsyncadd [#allocation3], 4294967168 }
   0xb   :  { %211 = dma.done.wait [#allocation6], 16  }
   0xc   :  { %212 = vsyncadd [#allocation6], 4294967280  ;;  %v116_v0 = vld [vmem:[#allocation2] sm:$0xff]   ;;  %v219_v5 = vmov 128.0   ;;  %v130_v32 = vld [vmem:[#allocation5] ss:$0 sm:$0xff] }
   0xd   :  { %v117_v1 = vunpack.c.l.bf16 %v116_v0  ;;  %v118_v3 = vunpack.c.h.bf16 %v116_v0  ;;  %131 = vrcp.f32 %v219_v5  ;;  %s220_s0 = smov [#allocation7]   ;;  %s101_s23 = sshll.u32 %s253_s2, 4  ;;  %s102_s23 = int_to_ptr.hbm [resolvable:$true] %s101_s23 }
   0xe   :  { %s99_s1 = sshll.u32 %s220_s0, 4  ;;  %s100_s1 = int_to_ptr.vmem [resolvable:$true] %s99_s1 }
   0xf   :  { %v46_v2 = vmul.f32 %v117_v1, %v117_v1  ;;  %v47_v4 = vmul.f32 %v118_v3, %v118_v3 }
  0x11   :  { %48 = vadd.xlane.f32.xlu0 %v46_v2 }
  0x13   :  { %v132_v6 = vpop.eup %131 }
  0x14   :  { %v53_v7 = vmul.f32 128.0, %v132_v6  ;;  %vm57_vm0 = vweird.f32 %v132_v6 }
  0x16   :  { %v54_v8 = vsub.f32 1.0, %v53_v7 }
  0x18   :  { %v55_v9 = vmul.f32 %v132_v6, %v54_v8 }
  0x19   :  { %50 = vadd.xlane.f32.xlu0 %v47_v4 }
  0x1a   :  { %v56_v10 = vadd.f32 %v132_v6, %v55_v9 }
  0x1c   :  { %v58_v11 = vsel %vm57_vm0, %v132_v6, %v56_v10 }
  0x84   :  { %v49_v12 = vpop.xlane.xlu0 %48 }
  0x85   :  { %v59_v13 = vmul.f32 %v58_v11, %v49_v12 }
  0x87   :  { %v61_v14 = vadd.f32 1e-06, %v59_v13 }
  0x89   :  { %133 = vrsqrt.f32 %v61_v14  ;;  %vm69_vm2 = vweird.f32 %v61_v14 }
  0x8c   :  { %v51_v15 = vpop.xlane.xlu0 %50 }
  0x8d   :  { %v60_v16 = vmul.f32 %v58_v11, %v51_v15 }
  0x8f   :  { %v134_v17 = vpop.eup %133  ;;  %v62_v18 = vadd.f32 1e-06, %v60_v16 }
  0x90   :  { %v64_v19 = vmul.f32 %v134_v17, %v61_v14  ;;  %vm70_vm1 = vweird.f32 %v134_v17 }
  0x91   :  { %135 = vrsqrt.f32 %v62_v18  ;;  %vm71_vm3 = vmor %vm69_vm2, %vm70_vm1  ;;  %vm79_vm5 = vweird.f32 %v62_v18 }
  0x92   :  { %v65_v20 = vmul.f32 %v134_v17, %v64_v19 }
  0x94   :  { %v66_v21 = vmul.f32 0.5, %v65_v20 }
  0x96   :  { %v67_v22 = vsub.f32 1.5, %v66_v21 }
  0x97   :  { %v136_v23 = vpop.eup %135 }
  0x98   :  { %v74_v24 = vmul.f32 %v136_v23, %v62_v18  ;;  %v68_v25 = vmul.f32 %v134_v17, %v67_v22  ;;  %vm80_vm4 = vweird.f32 %v136_v23 }
  0x99   :  { %vm81_vm6 = vmor %vm79_vm5, %vm80_vm4 }
  0x9a   :  { %v75_v26 = vmul.f32 %v136_v23, %v74_v24  ;;  %v72_v28 = vsel %vm71_vm3, %v134_v17, %v68_v25 }
  0x9b   :  { %v83_v31 = vmul.f32 %v117_v1, %v72_v28 }
  0x9c   :  { %v76_v27 = vmul.f32 0.5, %v75_v26 }
  0x9d   :  { %v89_v35 = vmul.f32 %v130_v32, %v83_v31 }
  0x9e   :  { %v77_v29 = vsub.f32 1.5, %v76_v27 }
  0xa0   :  { %v78_v30 = vmul.f32 %v136_v23, %v77_v29 }
  0xa2   :  { %v82_v33 = vsel %vm81_vm6, %v136_v23, %v78_v30 }
  0xa3   :  { %v84_v34 = vmul.f32 %v118_v3, %v82_v33 }
  0xa5   :  { %v90_v36 = vmul.f32 %v130_v32, %v84_v34 }
  0xa7   :  { %v122_v37 = vpack.c.bf16 %v90_v36, %v89_v35 }
  0xa9   :  { %123 = vst [vmem:[#allocation7] sm:$0xff] %v122_v37  }
  0xaa   :  { %107 = dma.vmem_to_hbm [thread:$0]  %s100_s1, 128, %s102_s23, [#allocation4], %s216_s17, %s216_s17, %s217_s18  }
  0xab   :  { %213 = dma.done.wait [#allocation4], 128  }
  0xac   :  { %214 = vsyncadd [#allocation4], 4294967168 }
  0xad   :  { %112 = vsyncpa [#allocation3], 1 }
  0xae   :  { %113 = vsyncpa [#allocation6], 1 }
  0xaf   :  { %114 = vsyncpa [#allocation4], 1 }

</bundles_post_ra>
